<compile_context>
chip_gen: v5e
topology: v5e:2x2
jax: 0.10.0
libtpu: 0.0.40
codegen_flags: <defaults>
</compile_context>

<pallas_src>
import jax
import jax.numpy as jnp
from jax.experimental import pallas as pl
from jax.experimental.pallas import tpu as pltpu

# Fixed (non-trainable) Gaussian kernel from the module's __init__.
KA = 0.03797616    # corners
KB = 0.044863533   # edges
KC = 0.053         # center
KERNEL_2D = ((KA, KB, KA), (KB, KC, KB), (KA, KB, KA))

# Keep pipeline buffers comfortably inside the smallest scoped-VMEM default (v5e: 16 MiB).
_VMEM_BUDGET_BYTES = 12 * 1024 * 1024


def _gaussian_blur_kernel(x_ref, o_ref, xpad_ref):
    """x_ref: (B, H, W) unpadded planes; o_ref: (B, H+2, W+2); xpad_ref: (B, H+4, W+4) f32 scratch."""
    _, H, W = x_ref.shape
    _, Ho, Wo = o_ref.shape

    # Fused padding=2: rebuild the zero halo every grid step (scratch persists across
    # iterations), then overwrite the interior with the current block (single cast).
    xpad_ref[...] = jnp.zeros_like(xpad_ref)
    xpad_ref[:, 2:2 + H, 2:2 + W] = x_ref[...].astype(jnp.float32)

    # Exact 3x3 conv using the row symmetry of the kernel:
    #   rows 0 and 2 share weights [a, b, a]; row 1 has [b, c, b].
    top_bot = xpad_ref[:, 0:Ho, :] + xpad_ref[:, 2:Ho + 2, :]   # (B, Ho, Wp)
    mid = xpad_ref[:, 1:Ho + 1, :]                              # (B, Ho, Wp)
    out = (KA * (top_bot[:, :, 0:Wo] + top_bot[:, :, 2:Wo + 2])
           + KB * top_bot[:, :, 1:Wo + 1]
           + KB * (mid[:, :, 0:Wo] + mid[:, :, 2:Wo + 2])
           + KC * mid[:, :, 1:Wo + 1])
    o_ref[...] = out.astype(o_ref.dtype)


def _choose_plane_block(P, H, W, Ho, Wo, Hp, Wp):
    """Largest divisor of P that fits the VMEM budget and keeps >= 2 grid steps when P >= 2."""
    # Double-buffered input + output blocks plus the single padded f32 scratch, per plane.
    bytes_per_plane = 4 * (2 * H * W + 2 * Ho * Wo + Hp * Wp)
    cap = max(1, _VMEM_BUDGET_BYTES // bytes_per_plane)
    if P >= 2:
        cap = min(cap, (P + 1) // 2)   # leave >= 2 parallel grid steps for v7x's 2 TensorCores
    cap = min(cap, P)
    return max(d for d in range(1, cap + 1) if P % d == 0)


def gaussian_blur(x):
    """x: (N, 3, H, W) -> (N, 3, H+2, W+2)  (PyTorch F.conv2d(k=3, padding=2) per channel)."""
    N, C, H, W = x.shape
    assert C == 3, "GaussianBlur expects exactly 3 channels"
    Ho, Wo = H + 2, W + 2
    Hp, Wp = H + 4, W + 4
    P = N * C

    planes = x.reshape(P, H, W)          # free reshape; no wrapper-side padding
    B = _choose_plane_block(P, H, W, Ho, Wo, Hp, Wp)
    grid = (P // B,)

    # TODO(synk): for very large images (a whole padded plane no longer fits the VMEM budget),
    # tile H with a 2-row halo (overlapping H windows) instead of loading full planes.

    out = pl.pallas_call(
        _gaussian_blur_kernel,
        out_shape=jax.ShapeDtypeStruct((P, Ho, Wo), x.dtype),
        grid_spec=pltpu.PrefetchScalarGridSpec(
            num_scalar_prefetch=0,
            grid=grid,
            in_specs=[pl.BlockSpec((B, H, W), lambda i: (i, 0, 0))],
            out_specs=pl.BlockSpec((B, Ho, Wo), lambda i: (i, 0, 0)),
            scratch_shapes=[pltpu.VMEM((B, Hp, Wp), jnp.float32)],
        ),
        compiler_params=pltpu.CompilerParams(dimension_semantics=("parallel",)),
        cost_estimate=pl.CostEstimate(
            flops=12 * P * Ho * Wo,
            transcendentals=0,
            bytes_accessed=4 * P * (H * W + Ho * Wo),
        ),
    )(planes)

    return out.reshape(N, C, Ho, Wo)


def gaussian_blur_ref(x):
    """Pure-JAX reference mirroring the PyTorch module (per-channel conv2d, padding=2)."""
    w = jnp.asarray(KERNEL_2D, jnp.float32)[None, None]  # (1, 1, 3, 3) OIHW
    outs = []
    for c in range(3):
        xi = x[:, c:c + 1]
        o = jax.lax.conv_general_dilated(
            xi, w, window_strides=(1, 1), padding=[(2, 2), (2, 2)],
            dimension_numbers=("NCHW", "OIHW", "NCHW"))
        outs.append(o)
    return jnp.concatenate(outs, axis=1)


if __name__ == "__main__":
    key = jax.random.PRNGKey(0)
    x = jax.random.normal(key, (2, 3, 16, 16), dtype=jnp.float32)

    y = jax.block_until_ready(gaussian_blur(x))
    y_ref = gaussian_blur_ref(x)

    assert y.shape == (2, 3, 18, 18), y.shape
    assert jnp.allclose(y, y_ref, atol=1e-5, rtol=1e-5), "mismatch vs reference"

    print("KERNEL_OK")
</pallas_src>

<mosaic_0001>
module attributes {stable_mosaic.version = 11 : i64} {
  func.func @_gaussian_blur_kernel(%arg0: i32, %arg1: memref<3x16x16xf32, #tpu.memory_space<vmem>>, %arg2: memref<3x18x18xf32, #tpu.memory_space<vmem>>, %arg3: memref<3x20x20xf32, #tpu.memory_space<vmem>>) attributes {dimension_semantics = [#tpu.dimension_semantics<parallel>], iteration_bounds = array<i64: 2>, scalar_prefetch = 0 : i64, scratch_operands = 1 : i64, tpu.core_type = #tpu.core_type<tc>, window_params = [{transform_indices = @transform_0, window_bounds = array<i64: 3, 16, 16>}, {transform_indices = @transform_1, window_bounds = array<i64: 3, 18, 18>}]} {
    %cst = arith.constant 0.000000e+00 : f32
    %0 = vector.broadcast %cst : f32 to vector<3x20x20xf32>
    %c0 = arith.constant 0 : index
    %c0_0 = arith.constant 0 : index
    %c0_1 = arith.constant 0 : index
    %1 = vector.load %arg3[%c0, %c0_0, %c0_1] : memref<3x20x20xf32, #tpu.memory_space<vmem>>, vector<3x20x20xf32>
    tpu.vector_store %arg3[%c0, %c0_0, %c0_1], %0 {strides = array<i32>} : memref<3x20x20xf32, #tpu.memory_space<vmem>>, vector<3x20x20xf32>,
    %c0_2 = arith.constant 0 : index
    %c0_3 = arith.constant 0 : index
    %c0_4 = arith.constant 0 : index
    %2 = vector.load %arg1[%c0_2, %c0_3, %c0_4] : memref<3x16x16xf32, #tpu.memory_space<vmem>>, vector<3x16x16xf32>
    %c0_5 = arith.constant 0 : index
    %c2 = arith.constant 2 : index
    %c2_6 = arith.constant 2 : index
    %3 = vector.load %arg3[%c0_5, %c2, %c2_6] : memref<3x20x20xf32, #tpu.memory_space<vmem>>, vector<3x16x16xf32>
    tpu.vector_store %arg3[%c0_5, %c2, %c2_6], %2 {strides = array<i32>} : memref<3x20x20xf32, #tpu.memory_space<vmem>>, vector<3x16x16xf32>,
    %c0_7 = arith.constant 0 : index
    %c0_8 = arith.constant 0 : index
    %c0_9 = arith.constant 0 : index
    %4 = vector.load %arg3[%c0_7, %c0_8, %c0_9] : memref<3x20x20xf32, #tpu.memory_space<vmem>>, vector<3x18x20xf32>
    %c0_10 = arith.constant 0 : index
    %c2_11 = arith.constant 2 : index
    %c0_12 = arith.constant 0 : index
    %5 = vector.load %arg3[%c0_10, %c2_11, %c0_12] : memref<3x20x20xf32, #tpu.memory_space<vmem>>, vector<3x18x20xf32>
    %6 = arith.addf %4, %5 : vector<3x18x20xf32>
    %c0_13 = arith.constant 0 : index
    %c1 = arith.constant 1 : index
    %c0_14 = arith.constant 0 : index
    %7 = vector.load %arg3[%c0_13, %c1, %c0_14] : memref<3x20x20xf32, #tpu.memory_space<vmem>>, vector<3x18x20xf32>
    %8 = vector.extract_strided_slice %6 {offsets = [0, 0, 0], sizes = [3, 18, 18], strides = [1, 1, 1]} : vector<3x18x20xf32> to vector<3x18x18xf32>
    %9 = vector.extract_strided_slice %6 {offsets = [0, 0, 2], sizes = [3, 18, 18], strides = [1, 1, 1]} : vector<3x18x20xf32> to vector<3x18x18xf32>
    %10 = arith.addf %8, %9 : vector<3x18x18xf32>
    %cst_15 = arith.constant 0.0379761606 : f32
    %11 = vector.broadcast %cst_15 : f32 to vector<3x18x18xf32>
    %12 = arith.mulf %11, %10 : vector<3x18x18xf32>
    %13 = vector.extract_strided_slice %6 {offsets = [0, 0, 1], sizes = [3, 18, 18], strides = [1, 1, 1]} : vector<3x18x20xf32> to vector<3x18x18xf32>
    %cst_16 = arith.constant 0.0448635332 : f32
    %14 = vector.broadcast %cst_16 : f32 to vector<3x18x18xf32>
    %15 = arith.mulf %14, %13 : vector<3x18x18xf32>
    %16 = arith.addf %12, %15 : vector<3x18x18xf32>
    %17 = vector.extract_strided_slice %7 {offsets = [0, 0, 0], sizes = [3, 18, 18], strides = [1, 1, 1]} : vector<3x18x20xf32> to vector<3x18x18xf32>
    %18 = vector.extract_strided_slice %7 {offsets = [0, 0, 2], sizes = [3, 18, 18], strides = [1, 1, 1]} : vector<3x18x20xf32> to vector<3x18x18xf32>
    %19 = arith.addf %17, %18 : vector<3x18x18xf32>
    %cst_17 = arith.constant 0.0448635332 : f32
    %20 = vector.broadcast %cst_17 : f32 to vector<3x18x18xf32>
    %21 = arith.mulf %20, %19 : vector<3x18x18xf32>
    %22 = arith.addf %16, %21 : vector<3x18x18xf32>
    %23 = vector.extract_strided_slice %7 {offsets = [0, 0, 1], sizes = [3, 18, 18], strides = [1, 1, 1]} : vector<3x18x20xf32> to vector<3x18x18xf32>
    %cst_18 = arith.constant 5.300000e-02 : f32
    %24 = vector.broadcast %cst_18 : f32 to vector<3x18x18xf32>
    %25 = arith.mulf %24, %23 : vector<3x18x18xf32>
    %26 = arith.addf %22, %25 : vector<3x18x18xf32>
    %c0_19 = arith.constant 0 : index
    %c0_20 = arith.constant 0 : index
    %c0_21 = arith.constant 0 : index
    %27 = vector.load %arg2[%c0_19, %c0_20, %c0_21] : memref<3x18x18xf32, #tpu.memory_space<vmem>>, vector<3x18x18xf32>
    tpu.vector_store %arg2[%c0_19, %c0_20, %c0_21], %26 {strides = array<i32>} : memref<3x18x18xf32, #tpu.memory_space<vmem>>, vector<3x18x18xf32>,
    return
  }
  func.func @transform_0(%arg0: i32) -> (i32, i32, i32) {
    %c0_i32 = arith.constant 0 : i32
    %c0_i32_0 = arith.constant 0 : i32
    %c0_i32_1 = arith.constant 0 : i32
    return %arg0, %c0_i32, %c0_i32_0 : i32, i32, i32
  }
  func.func @transform_1(%arg0: i32) -> (i32, i32, i32) {
    %c0_i32 = arith.constant 0 : i32
    %c0_i32_0 = arith.constant 0 : i32
    %c0_i32_1 = arith.constant 0 : i32
    return %arg0, %c0_i32, %c0_i32_0 : i32, i32, i32
  }
}

</mosaic_0001>

<bundles_post_ra>
// kernel: tpu_custom_call.1
= control target key start
LH: loop header
LB: loop body
LE: loop exit
PB: predicated region body
PF: predicated region fallthrough
CT: control target
= control target key end

     0   :  { %6 = vsyncpa [#allocation4], 0  ;;  %s1017_s0 = inlined_call_operand.hbm [shape: f32[6,16,16], index: 0, kind: input, shape index: {}]   ;;  %s1018_s1 = inlined_call_operand.hbm [shape: f32[6,18,18], index: 1, kind: output, shape index: {}]  }
   0x1   :  { %8 = vsyncpa [#allocation4 + $0x1], 0 }
   0x2   :  { %9 = vsyncpa [#allocation5], 0 }
   0x3   :  { %11 = vsyncpa [#allocation5 + $0x1], 0  ;;  %s737_s6 = smov 0   ;;  %s739_s7 = smov 0  }
   0x4   :  { %s741_s8 = smov 0   ;;  %s743_s9 = smov 0  }
   0x5 LB: > { %s758_s10 = sadd.s32 4294967295, %s717_s9   ;;  %s550_s11 = sadd.s32 4294967294, %s717_s9   ;;  %s717_s9 = sphi %s743_s9, %s1026_s9   ;;  %s713_s8 = sphi %s741_s8, %s1025_s8   ;;  %s709_s7 = sphi %s739_s7, %s1024_s7   ;;  %s705_s6 = sphi %s737_s6, %s1023_s6  }
   0x6   : > { %s762_s12 = sadd.s32 1, %s717_s9   ;;  %s24_s13 = sadd.s32 1, %s713_s8 }
   0x7   : > { %s21_s14 = ssub.s32 %s717_s9, %s762_s12  ;;  %p31_p0 = scmp.ne.s32.totalorder %s713_s8, %s709_s7 }
   0x8   : > { %p22_p1 = scmp.eq.s32.totalorder %s21_s14, 0  ;;  %p32_p2 = scmp.eq.s32.totalorder %s717_s9, 0 }
   0x9   : > { %p37_p3 = scmp.ne.s32.totalorder %s709_s7, %s705_s6  ;;  %p38_p4 = scmp.eq.s32.totalorder %s758_s10, 0 }
   0xa   : > { %s774_s15 = scalar_select %p22_p1, %s713_s8, %s24_s13  }
   0xb   : > { %p33_p5 = por %p32_p2, %p31_p0  ;;  %p776_p6 = por %p38_p4, %p37_p3 }
   0xc   : > { %p61_p7 = scmp.eq.s32.totalorder %s758_s10, 1  ;;  %p67_p8 = scmp.eq.s32.totalorder %s550_s11, 1 }
   0xd   : > { %p552_p9 = scmp.ge.s32.totalorder %s717_s9, 2  ;;  %p578_p10 = scmp.lt.s32.totalorder %s717_s9, 2 }
   0xe   : > { %p783_p11 = por %p61_p7, %p31_p0  ;;  %p787_p12 = por %p67_p8, %p37_p3 }
   0xf   : > { %s87_s19 = sand.u32 1, %s713_s8   ;;  %s561_s20 = smul.u32 48, %s717_s9 }
  0x10   : > { %s562_s21 = smul.u32 48, %s87_s19  ;;  %p796_p13 = pnand %p578_p10, %p33_p5 }
  0x11   : > { %s97_s24 = scalar_lea.hbm %s1017_s0, %s561_s20  ;;  %s88_s29 = scalar_lea.sflag [#allocation4], %s87_s19 }
  0x12   : > { %s98_s26 = sshll.u32 %s97_s24, 4  ;;  %s91_s27 = scalar_lea.vmem [#allocation3], %s562_s21  ;;  %s99_s26 = int_to_ptr.hbm [resolvable:$true] %s98_s26 }
  0x13   : > { %s100_s28 = sshll.u32 %s91_s27, 4  ;;  %s621_s30 = sshra.s32 %s99_s26, 4  ;;  %s101_s28 = int_to_ptr.vmem [resolvable:$true] %s100_s28  ;;  %s622_s30 = int_to_ptr.hbm [resolvable:$true] %s621_s30 }
  0x14   : > { %s623_s2 = scalar_lea.hbm %s622_s30, 48  ;;  %p625_p1 = pneg %p796_p13 }
  0x15   : > { %p624_p0 = scmp.ne.s32.totalorder %s622_s30, %s623_s2  ;;  %s628_s5 = scalar_lea.hbm %s1017_s0, 96 }
  0x16   : > { %p629_p4 = scmp.lt.s32.totalorder %s622_s30, %s1017_s0  ;;  %p630_p5 = scmp.lt.s32.totalorder %s628_s5, %s623_s2 }
  0x17   : > { %p626_p2 = pnand %p625_p1, %p624_p0 }
  0x18   : > { %p631_p7 = por %p630_p5, %p629_p4 }
  0x19   : > { %p627_p3 = pneg %p626_p2 }
  0x1b   : > { %p632_p8 = pnand %p631_p7, %p627_p3 }
  0x1d   : > { %635 = shalt.err (!%p632_p8)
}
  0x1e   : > { %s719_s14 = smov 128   ;;  %s720_s19 = smov 8  }
  0x1f   : > { %573 = dma.hbm_to_vmem [thread:$0]  (!%p796_p13), %s99_s26, 768, %s101_s28, %s88_s29, %s719_s14, %s719_s14, %s720_s19  }
  0x20   : > { %p555_p10 = scmp.ge.s32.totalorder %s717_s9, 1  ;;  %p108_p0 = scmp.lt.s32.totalorder %s717_s9, 3 }
  0x22   : > { %p109_p1 = pnand %p555_p10, %p108_p0 }
  0x23   : > { %s813_s20 = sand.u32 (!%p109_p1), 1, %s709_s7  }
  0x24   : > { %112 = sbr.rel (%p109_p1) target bundleno = 384 (0x180), region = 24  ;;  %s115_s22 = scalar_lea.sflag (!%p109_p1), [#allocation4], %s813_s20 }
  0x25   : > { %s563_s21 = smul.u32 (!%p109_p1), 48, %s813_s20 }
  0x27   : > { %s118_s23 = scalar_lea.vmem (!%p109_p1), [#allocation3], %s563_s21 }
  0x29   : > { %696 = dma.done.wait (%p776_p6), %s115_s22, 768  }
  0x2a   : > { %698 = vsyncadd (%p776_p6), %s115_s22, 4294966528  ;;  %vm140_vm0 = vcmask 162816   ;;  %v721_v0 = vmov 0.0   ;;  %v153_v1 = vld [vmem:[%s118_s23 + $0x10] sm:$0xff]  ;;  %v151_v2 = vld [vmem:[%s118_s23] sm:$0xff]  ;;  %s722_s24 = smov 2  }
  0x2b   : > { %145 = vst.msk [vmem:[#allocation2 + $0x18] sm:$0xff] %vm140_vm0, %v721_v0  ;;  %167 = vrot.lane.b32.xlu1 %v153_v1, %s722_s24  ;;  %163 = vrot.lane.b32.xlu0 %v151_v2, %s722_s24  ;;  %v155_v3 = vld [vmem:[%s118_s23 + $0x20] sm:$0xff]  ;;  %v154_v4 = vld [vmem:[%s118_s23 + $0x18] sm:$0xff]  ;;  %vm143_vm1 = vcmask 158720   ;;  %vm181_vm2 = vcmask 146448   ;;  %s723_s16 = smov 126  }
  0x2c   : > { %146 = vst.msk [vmem:[#allocation2 + $0x20] sm:$0xff] %vm140_vm0, %v721_v0  ;;  %171 = vrot.lane.b32.xlu2 %v155_v3, %s722_s24  ;;  %v152_v5 = vld [vmem:[%s118_s23 + $0x8] sm:$0xff]  ;;  %s724_s25 = smov 127   ;;  %s564_s26 = smul.u32 72, %s813_s20  ;;  %vm452_vm3 = vcmask 140288   ;;  %vm449_vm4 = vcmask 146432  }
  0x2d   : > { %141 = vst.msk [vmem:[#allocation2] sm:$0xff] %vm140_vm0, %v721_v0  ;;  %v156_v6 = vld [vmem:[%s118_s23 + $0x28] sm:$0xff]  ;;  %s579_s28 = smul.u32 72, %s758_s10  ;;  %s461_s4 = scalar_lea.sflag [#allocation5], %s813_s20 }
  0x2e   : > { %142 = vst.msk [vmem:[#allocation2 + $0x8] sm:$0xff] %vm140_vm0, %v721_v0  ;;  %s944_s27 = scalar_lea.vmem [#allocation6], %s564_s26  ;;  %s671_s19 = scalar_lea.hbm %s1018_s1, 144 }
  0x2f   : > { %148 = vst.msk [vmem:[#allocation2 + $0x30] sm:$0xff] %vm140_vm0, %v721_v0  ;;  %s473_s2 = scalar_lea.hbm %s1018_s1, %s579_s28  ;;  %s474_s10 = sshll.u32 %s944_s27, 4  ;;  %s475_s10 = int_to_ptr.vmem [resolvable:$true] %s474_s10 }
  0x30   : > { %149 = vst.msk [vmem:[#allocation2 + $0x38] sm:$0xff] %vm140_vm0, %v721_v0  ;;  %s476_s3 = sshll.u32 %s473_s2, 4  ;;  %s477_s3 = int_to_ptr.hbm [resolvable:$true] %s476_s3 }
  0x31   : > { %147 = vst.msk [vmem:[#allocation2 + $0x28] sm:$0xf] %vm143_vm1, %v721_v0  ;;  %s665_s5 = sshra.s32 %s477_s3, 4  ;;  %s666_s5 = int_to_ptr.hbm [resolvable:$true] %s665_s5 }
  0x32   : > { %144 = vst.msk [vmem:[#allocation2 + $0x10] sm:$0xf] %vm143_vm1, %v721_v0  ;;  %s667_s11 = scalar_lea.hbm %s666_s5, 72  ;;  %p672_p3 = scmp.lt.s32.totalorder %s666_s5, %s1018_s1 }
  0x33   : > { %169 = vrot.lane.b32.xlu1 %v154_v4, %s722_s24  ;;  %165 = vrot.lane.b32.xlu0 %v152_v5, %s722_s24  ;;  %150 = vst.msk [vmem:[#allocation2 + $0x40] sm:$0xf] %vm143_vm1, %v721_v0  ;;  %p668_p6 = scmp.ne.s32.totalorder %s666_s5, %s667_s11  ;;  %p673_p4 = scmp.lt.s32.totalorder %s671_s19, %s667_s11 }
  0x34   : > { %173 = vrot.lane.b32.xlu2 %v156_v6, %s722_s24 }
  0x35   : > { %p669_p13 = pnand %p668_p6, %p783_p11  ;;  %p674_p5 = por %p673_p4, %p672_p3 }
  0x37   : > { %p670_p2 = pneg %p669_p13 }
  0x38   : > { %v202_v34 = vld [vmem:[#allocation2 + $0x2a] sm:$0x3] }
  0x39   : > { %v199_v25 = vld [vmem:[#allocation2 + $0x12] sm:$0x3]  ;;  %p675_p7 = pnand %p674_p5, %p670_p2 }
  0x3a   : > { %v205_v45 = vld [vmem:[#allocation2 + $0x42] sm:$0x3] }
  0x86   : > { %v172_v7 = vpop.permute.xlu2 %171 }
  0x87   : > { %186 = vst.msk [vmem:[#allocation2 + $0x32] sm:$0xff] %vm181_vm2, %v172_v7 }
  0x8e   : > { %v174_v8 = vpop.permute.xlu2 %173  ;;  %v839_v18 = vld [vmem:[#allocation2 + $0x31] sm:$0xff] }
  0x8f   : > { %187 = vst.msk [vmem:[#allocation2 + $0x3a] sm:$0xff] %vm181_vm2, %v174_v8  ;;  %v194_v38 = vld [vmem:[#allocation2 + $0x30] sm:$0xff]  ;;  %v401_v0 = vmul.f32 0.053, %v839_v18 }
  0x90   : > { %v203_v39 = vld [vmem:[#allocation2 + $0x32] sm:$0xff] }
  0x91   : > { %v877_v42 = vadd.f32 %v203_v39, %v194_v38 }
  0x93   : > { %v284_v61 = vmul.f32 0.044863533, %v877_v42 }
  0x96   : > { %v849_v22 = vld [vmem:[#allocation2 + $0x41] sm:$0x3]  ;;  %v851_v23 = vld [vmem:[#allocation2 + $0x39] sm:$0xff] }
  0x97   : > { %v195_v43 = vld [vmem:[#allocation2 + $0x38] sm:$0xff]  ;;  %v196_v44 = vld [vmem:[#allocation2 + $0x40] sm:$0x3]  ;;  %v403_v1 = vmul.f32 0.053, %v849_v22 }
  0x98   : > { %v204_v46 = vld [vmem:[#allocation2 + $0x3a] sm:$0xff]  ;;  %v885_v47 = vadd.f32 %v205_v45, %v196_v44  ;;  %v402_v2 = vmul.f32 0.053, %v851_v23 }
  0x99   : > { %v887_v48 = vadd.f32 %v204_v46, %v195_v43 }
  0x9a   : > { %v286_v62 = vmul.f32 0.044863533, %v885_v47 }
  0x9b   : > { %v285_v63 = vmul.f32 0.044863533, %v887_v48 }
  0x9d   : > { %v168_v9 = vpop.permute.xlu1 %167  ;;  %v164_v10 = vpop.permute.xlu0 %163 }
  0x9e   : > { %184 = vst.msk [vmem:[#allocation2 + $0x1a] sm:$0xff] %vm181_vm2, %v168_v9 }
  0x9f   : > { %182 = vst.msk [vmem:[#allocation2 + $0x2] sm:$0xff] %vm181_vm2, %v164_v10 }
  0xa5   : > { %v170_v11 = vpop.permute.xlu1 %169  ;;  %v166_v12 = vpop.permute.xlu0 %165  ;;  %v825_v14 = vld [vmem:[#allocation2 + $0x19] sm:$0xff] }
  0xa6   : > { %185 = vst.msk [vmem:[#allocation2 + $0x22] sm:$0xff] %vm181_vm2, %v170_v11  ;;  %v821_v13 = vld [vmem:[#allocation2 + $0x1] sm:$0xff]  ;;  %v191_v29 = vld [vmem:[#allocation2 + $0x18] sm:$0xff]  ;;  %v398_v52 = vmul.f32 0.053, %v825_v14 }
  0xa7   : > { %183 = vst.msk [vmem:[#allocation2 + $0xa] sm:$0xff] %vm181_vm2, %v166_v12  ;;  %341 = vrot.lane.b32.xlu0 %v821_v13, %s723_s16  ;;  %v188_v20 = vld [vmem:[#allocation2] sm:$0xff]  ;;  %v395_v49 = vmul.f32 0.053, %v821_v13 }
  0xa8   : > { %v197_v21 = vld [vmem:[#allocation2 + $0x2] sm:$0xff]  ;;  %v200_v30 = vld [vmem:[#allocation2 + $0x1a] sm:$0xff] }
  0xa9   : > { %v853_v24 = vadd.f32 %v197_v21, %v188_v20  ;;  %v865_v33 = vadd.f32 %v200_v30, %v191_v29 }
  0xab   : > { %v278_v55 = vmul.f32 0.044863533, %v853_v24  ;;  %v281_v58 = vmul.f32 0.044863533, %v865_v33 }
  0xad   : > { %v837_v17 = vld [vmem:[#allocation2 + $0x29] sm:$0x3]  ;;  %v841_v19 = vld [vmem:[#allocation2 + $0x21] sm:$0xff] }
  0xae   : > { %v827_v15 = vld [vmem:[#allocation2 + $0x11] sm:$0x3]  ;;  %v829_v16 = vld [vmem:[#allocation2 + $0x9] sm:$0xff]  ;;  %v192_v36 = vld [vmem:[#allocation2 + $0x20] sm:$0xff]  ;;  %v400_v53 = vmul.f32 0.053, %v837_v17 }
  0xaf   : > { %345 = vrot.lane.b32.xlu2 %v827_v15, %s723_s16  ;;  %343 = vrot.lane.b32.xlu1 %v829_v16, %s723_s16  ;;  %v190_v26 = vld [vmem:[#allocation2 + $0x10] sm:$0x3]  ;;  %v189_v27 = vld [vmem:[#allocation2 + $0x8] sm:$0xff]  ;;  %v397_v50 = vmul.f32 0.053, %v827_v15 }
  0xb0   : > { %347 = vrot.lane.b32.xlu0 %v825_v14, %s723_s16  ;;  %v198_v28 = vld [vmem:[#allocation2 + $0xa] sm:$0xff]  ;;  %v861_v31 = vadd.f32 %v199_v25, %v190_v26  ;;  %v193_v35 = vld [vmem:[#allocation2 + $0x28] sm:$0x3]  ;;  %v396_v51 = vmul.f32 0.053, %v829_v16 }
  0xb1   : > { %v863_v32 = vadd.f32 %v198_v28, %v189_v27  ;;  %v201_v37 = vld [vmem:[#allocation2 + $0x22] sm:$0xff]  ;;  %v873_v40 = vadd.f32 %v202_v34, %v193_v35  ;;  %v399_v54 = vmul.f32 0.053, %v841_v19 }
  0xb2   : > { %v875_v41 = vadd.f32 %v201_v37, %v192_v36  ;;  %v280_v56 = vmul.f32 0.044863533, %v861_v31 }
  0xb3   : > { %v279_v57 = vmul.f32 0.044863533, %v863_v32  ;;  %v283_v59 = vmul.f32 0.044863533, %v873_v40 }
  0xb4   : > { %v282_v60 = vmul.f32 0.044863533, %v875_v41 }
  0xb7   : > { %351 = vrot.lane.b32.xlu2 %v837_v17, %s723_s16  ;;  %349 = vrot.lane.b32.xlu1 %v841_v19, %s723_s16 }
  0xb8   : > { %353 = vrot.lane.b32.xlu0 %v839_v18, %s723_s16 }
  0xbf   : > { %357 = vrot.lane.b32.xlu2 %v849_v22, %s723_s16  ;;  %355 = vrot.lane.b32.xlu1 %v851_v23, %s723_s16 }
  0xc0   : > { %233 = vrot.lane.b32.xlu0 %v853_v24, %s723_s16 }
  0xc7   : > { %237 = vrot.lane.b32.xlu2 %v861_v31, %s723_s16  ;;  %235 = vrot.lane.b32.xlu1 %v863_v32, %s723_s16 }
  0xc8   : > { %239 = vrot.lane.b32.xlu0 %v865_v33, %s723_s16 }
  0xcf   : > { %243 = vrot.lane.b32.xlu2 %v873_v40, %s723_s16  ;;  %241 = vrot.lane.b32.xlu1 %v875_v41, %s723_s16 }
  0xd0   : > { %245 = vrot.lane.b32.xlu0 %v877_v42, %s723_s16 }
  0xd7   : > { %249 = vrot.lane.b32.xlu2 %v885_v47, %s723_s16  ;;  %247 = vrot.lane.b32.xlu1 %v887_v48, %s723_s16 }
  0xd8   : > { %413 = vrot.lane.b32.xlu0 %v395_v49, %s724_s25 }
  0xdf   : > { %417 = vrot.lane.b32.xlu2 %v397_v50, %s724_s25  ;;  %415 = vrot.lane.b32.xlu1 %v396_v51, %s724_s25 }
  0xe0   : > { %419 = vrot.lane.b32.xlu0 %v398_v52, %s724_s25 }
  0xe7   : > { %423 = vrot.lane.b32.xlu2 %v400_v53, %s724_s25  ;;  %421 = vrot.lane.b32.xlu1 %v399_v54, %s724_s25 }
  0xe8   : > { %296 = vrot.lane.b32.xlu0 %v278_v55, %s724_s25 }
  0xef   : > { %300 = vrot.lane.b32.xlu2 %v280_v56, %s724_s25  ;;  %298 = vrot.lane.b32.xlu1 %v279_v57, %s724_s25 }
  0xf0   : > { %302 = vrot.lane.b32.xlu0 %v281_v58, %s724_s25 }
  0xf7   : > { %306 = vrot.lane.b32.xlu2 %v283_v59, %s724_s25  ;;  %304 = vrot.lane.b32.xlu1 %v282_v60, %s724_s25 }
  0xf8   : > { %308 = vrot.lane.b32.xlu0 %v284_v61, %s724_s25 }
  0xff   : > { %312 = vrot.lane.b32.xlu2 %v286_v62, %s724_s25  ;;  %310 = vrot.lane.b32.xlu1 %v285_v63, %s724_s25 }
 0x100   : > { %425 = vrot.lane.b32.xlu0 %v401_v0, %s724_s25 }
 0x107   : > { %429 = vrot.lane.b32.xlu2 %v403_v1, %s724_s25  ;;  %427 = vrot.lane.b32.xlu1 %v402_v2, %s724_s25 }
 0x109   : > { %v346_v3 = vpop.permute.xlu2 %345 }
 0x10a   : > { %v370_v36 = vadd.f32 %v346_v3, %v827_v15 }
 0x10c   : > { %v379_v43 = vmul.f32 0.044863533, %v370_v36 }
 0x111   : > { %v352_v4 = vpop.permute.xlu2 %351 }
 0x112   : > { %v373_v50 = vadd.f32 %v352_v4, %v837_v17 }
 0x114   : > { %v382_v53 = vmul.f32 0.044863533, %v373_v50 }
 0x119   : > { %v358_v5 = vpop.permute.xlu2 %357  ;;  %v342_v6 = vpop.permute.xlu0 %341 }
 0x11a   : > { %v368_v17 = vadd.f32 %v342_v6, %v821_v13  ;;  %v376_v62 = vadd.f32 %v358_v5, %v849_v22 }
 0x11c   : > { %v377_v1 = vmul.f32 0.044863533, %v368_v17 }
 0x121   : > { %v238_v7 = vpop.permute.xlu2 %237  ;;  %v344_v8 = vpop.permute.xlu1 %343 }
 0x122   : > { %v348_v9 = vpop.permute.xlu0 %347  ;;  %v262_v35 = vadd.f32 %v238_v7, %v861_v31  ;;  %v385_v7 = vmul.f32 0.044863533, %v376_v62  ;;  %v369_v13 = vadd.f32 %v344_v8, %v829_v16 }
 0x123   : > { %v371_v6 = vadd.f32 %v348_v9, %v825_v14 }
 0x124   : > { %v271_v37 = vmul.f32 0.03797616, %v262_v35 }
 0x129   : > { %v244_v10 = vpop.permute.xlu2 %243  ;;  %v929_v11 = vpop.permute.xlu1 %349 }
 0x12a   : > { %v931_v12 = vpop.permute.xlu0 %353  ;;  %v265_v46 = vadd.f32 %v244_v10, %v873_v40  ;;  %v372_v35 = vadd.f32 %v929_v11, %v841_v19 }
 0x12c   : > { %v274_v52 = vmul.f32 0.03797616, %v265_v46  ;;  %v374_v46 = vadd.f32 %v931_v12, %v839_v18 }
 0x12e   : > { %v383_v50 = vmul.f32 0.044863533, %v374_v46 }
 0x131   : > { %v250_v20 = vpop.permute.xlu2 %249  ;;  %v933_v21 = vpop.permute.xlu1 %355 }
 0x132   : > { %v234_v25 = vpop.permute.xlu0 %233  ;;  %v268_v57 = vadd.f32 %v250_v20, %v885_v47 }
 0x133   : > { %v260_v40 = vadd.f32 %v234_v25, %v853_v24 }
 0x134   : > { %v277_v63 = vmul.f32 0.03797616, %v268_v57 }
 0x135   : > { %v269_v59 = vmul.f32 0.03797616, %v260_v40 }
 0x139   : > { %v418_v26 = vpop.permute.xlu2 %417  ;;  %v236_v27 = vpop.permute.xlu1 %235 }
 0x13a   : > { %v240_v28 = vpop.permute.xlu0 %239  ;;  %v261_v3 = vadd.f32 %v236_v27, %v863_v32  ;;  %v378_v32 = vmul.f32 0.044863533, %v369_v13 }
 0x13b   : > { %v263_v47 = vadd.f32 %v240_v28, %v865_v33 }
 0x13c   : > { %v270_v22 = vmul.f32 0.03797616, %v261_v3 }
 0x13d   : > { %v272_v20 = vmul.f32 0.03797616, %v263_v47 }
 0x141   : > { %v424_v29 = vpop.permute.xlu2 %423  ;;  %v242_v30 = vpop.permute.xlu1 %241 }
 0x142   : > { %v935_v34 = vpop.permute.xlu0 %245  ;;  %v264_v8 = vadd.f32 %v242_v30, %v875_v41  ;;  %v381_v30 = vmul.f32 0.044863533, %v372_v35 }
 0x149   : > { %v301_v38 = vpop.permute.xlu2 %300  ;;  %v940_v39 = vpop.permute.xlu1 %247 }
 0x14a   : > { %v325_v44 = vadd.f32 %v301_v38, %v271_v37  ;;  %v414_v45 = vpop.permute.xlu0 %413  ;;  %v266_v37 = vadd.f32 %v935_v34, %v877_v42  ;;  %v267_v42 = vadd.f32 %v940_v39, %v887_v48 }
 0x14c   : > { %v388_v49 = vadd.f32 %v379_v43, %v325_v44  ;;  %v273_v43 = vmul.f32 0.03797616, %v264_v8  ;;  %v275_v19 = vmul.f32 0.03797616, %v266_v37  ;;  %v276_v18 = vmul.f32 0.03797616, %v267_v42 }
 0x14e   : > { %v442_v51 = vadd.f32 %v418_v26, %v388_v49 }
 0x150   : > { %453 = vst.msk [vmem:[%s944_s27 + $0x10] sm:$0x3] %vm452_vm3, %v442_v51 }
 0x151   : > { %v307_v15 = vpop.permute.xlu2 %306  ;;  %v416_v31 = vpop.permute.xlu1 %415 }
 0x152   : > { %v328_v54 = vadd.f32 %v307_v15, %v274_v52  ;;  %v420_v55 = vpop.permute.xlu0 %419  ;;  %v375_v15 = vadd.f32 %v933_v21, %v851_v23 }
 0x154   : > { %v391_v56 = vadd.f32 %v382_v53, %v328_v54  ;;  %v384_v39 = vmul.f32 0.044863533, %v375_v15 }
 0x156   : > { %v445_v58 = vadd.f32 %v424_v29, %v391_v56  ;;  %v380_v29 = vmul.f32 0.044863533, %v371_v6 }
 0x158   : > { %456 = vst.msk [vmem:[%s944_s27 + $0x28] sm:$0x3] %vm452_vm3, %v445_v58 }
 0x159   : > { %v313_v60 = vpop.permute.xlu2 %312  ;;  %v422_v61 = vpop.permute.xlu1 %421 }
 0x15a   : > { %v297_v0 = vpop.permute.xlu0 %296  ;;  %v331_v24 = vadd.f32 %v313_v60, %v277_v63 }
 0x15b   : > { %v323_v2 = vadd.f32 %v297_v0, %v269_v59 }
 0x15c   : > { %v394_v5 = vadd.f32 %v385_v7, %v331_v24 }
 0x15d   : > { %v386_v4 = vadd.f32 %v377_v1, %v323_v2 }
 0x15f   : > { %v440_v10 = vadd.f32 %v414_v45, %v386_v4 }
 0x161   : > { %450 = vst.msk [vmem:[%s944_s27] sm:$0xff] %vm449_vm4, %v440_v10  ;;  %v430_v25 = vpop.permute.xlu2 %429  ;;  %v299_v26 = vpop.permute.xlu1 %298 }
 0x162   : > { %v448_v33 = vadd.f32 %v430_v25, %v394_v5  ;;  %v324_v27 = vadd.f32 %v299_v26, %v270_v22  ;;  %v303_v28 = vpop.permute.xlu0 %302 }
 0x163   : > { %v326_v16 = vadd.f32 %v303_v28, %v272_v20 }
 0x164   : > { %459 = vst.msk [vmem:[%s944_s27 + $0x40] sm:$0x3] %vm452_vm3, %v448_v33  ;;  %v387_v14 = vadd.f32 %v378_v32, %v324_v27 }
 0x165   : > { %v389_v9 = vadd.f32 %v380_v29, %v326_v16 }
 0x166   : > { %v441_v36 = vadd.f32 %v416_v31, %v387_v14 }
 0x167   : > { %v443_v38 = vadd.f32 %v420_v55, %v389_v9 }
 0x168   : > { %451 = vst.msk [vmem:[%s944_s27 + $0x8] sm:$0xff] %vm449_vm4, %v441_v36 }
 0x169   : > { %454 = vst.msk [vmem:[%s944_s27 + $0x18] sm:$0xff] %vm449_vm4, %v443_v38  ;;  %v305_v41 = vpop.permute.xlu1 %304 }
 0x16a   : > { %v327_v44 = vadd.f32 %v305_v41, %v273_v43  ;;  %v309_v45 = vpop.permute.xlu0 %308 }
 0x16b   : > { %v329_v49 = vadd.f32 %v309_v45, %v275_v19 }
 0x16c   : > { %v390_v11 = vadd.f32 %v381_v30, %v327_v44 }
 0x16d   : > { %v392_v52 = vadd.f32 %v383_v50, %v329_v49 }
 0x16e   : > { %v444_v34 = vadd.f32 %v422_v61, %v390_v11 }
 0x170   : > { %455 = vst.msk [vmem:[%s944_s27 + $0x20] sm:$0xff] %vm449_vm4, %v444_v34 }
 0x171   : > { %v311_v51 = vpop.permute.xlu1 %310 }
 0x172   : > { %v426_v12 = vpop.permute.xlu0 %425  ;;  %v330_v48 = vadd.f32 %v311_v51, %v276_v18 }
 0x173   : > { %v446_v31 = vadd.f32 %v426_v12, %v392_v52 }
 0x174   : > { %v393_v53 = vadd.f32 %v384_v39, %v330_v48 }
 0x175   : > { %457 = vst.msk [vmem:[%s944_s27 + $0x30] sm:$0xff] %vm449_vm4, %v446_v31 }
 0x179   : > { %v428_v54 = vpop.permute.xlu1 %427 }
 0x17a   : > { %v447_v23 = vadd.f32 %v428_v54, %v393_v53 }
 0x17c   : > { %458 = vst.msk [vmem:[%s944_s27 + $0x38] sm:$0xff] %vm449_vm4, %v447_v23 }
 0x17d   : > { %678 = shalt.err (!%p675_p7)
}
 0x17e   : > { %s725_s20 = smov 128   ;;  %s726_s23 = smov 8  }
 0x17f   : > { %568 = dma.vmem_to_hbm [thread:$0]  (%p783_p11), %s475_s10, 1152, %s477_s3, %s461_s4, %s725_s20, %s725_s20, %s726_s23  }
 0x180 PF: > { %s491_s24 = sand.u32 1, %s705_s6   ;;  %p575_p8 = pnand %p552_p9, %p787_p12 }
 0x181   : > { %s492_s16 = scalar_lea.sflag [#allocation5], %s491_s24 }
 0x182   : > { %p576_p10 = pneg %p575_p8 }
 0x184   : > { %700 = dma.done.wait (%p576_p10), %s492_s16, 1152  }
 0x185   : > { %702 = vsyncadd (%p576_p10), %s492_s16, 4294966144  ;;  %p14_p0 = scmp.ge.s32.totalorder %s762_s12, 4   ;;  %s1023_s6 = smov %s709_s7 }
 0x186   : > { %s1024_s7 = smov %s713_s8  ;;  %s1025_s8 = smov %s774_s15 }
 0x187   : > { %s1026_s9 = smov %s762_s12  ;;  %16 = sbr.rel (!%p14_p0) target bundleno = 5 (0x5), region = 69 }
 0x18c   :  { %498 = vsyncpa [#allocation4], 1 }
 0x18d   :  { %500 = vsyncpa [#allocation4 + $0x1], 1 }
 0x18e   :  { %501 = vsyncpa [#allocation5], 1 }
 0x18f   :  { %503 = vsyncpa [#allocation5 + $0x1], 1 }

</bundles_post_ra>
